<compile_context>
chip_gen: v7x
topology: tpu7x:2x2x1
jax: 0.10.0
libtpu: 0.0.40
codegen_flags: <defaults>
</compile_context>

<pallas_src>
import functools

import jax
import jax.numpy as jnp
from jax.experimental import pallas as pl
from jax.experimental.pallas import tpu as pltpu


def _se_kernel(x_ref, w1t_ref, bn_scale_ref, bn_shift_ref, w2t_ref, o_ref, *, inv_hw):
    # x block streams in its native dtype; compute the SE path in f32.
    x = x_ref[...].astype(jnp.float32)                           # (Nb, C, HW)
    # AdaptiveAvgPool2d(1): sum over the logical HW extent (Mosaic masks the
    # physical lane padding), divide by the true H*W.
    pooled = jnp.sum(x, axis=-1) * inv_hw                        # (Nb, C)
    # 1x1 conv C->E (no bias): (Nb,C) @ (C,E) on the MXU.
    h = jnp.dot(pooled, w1t_ref[...],
                preferred_element_type=jnp.float32)              # (Nb, E)
    # BatchNorm2d (eval semantics, folded to per-channel affine) + ReLU.
    h = jnp.maximum(h * bn_scale_ref[...] + bn_shift_ref[...], 0.0)
    # 1x1 conv E->C (no bias): (Nb,E) @ (E,C).
    g = jnp.dot(h, w2t_ref[...],
                preferred_element_type=jnp.float32)              # (Nb, C)
    # Hardsigmoid: relu6(x+3)/6 == clip(x/6 + 0.5, 0, 1)  (mul-add, no divide).
    g = jnp.clip(g * (1.0 / 6.0) + 0.5, 0.0, 1.0)
    # x * se(x): broadcast the gate over spatial lanes; store in native dtype.
    o_ref[...] = (x * g[:, :, None]).astype(o_ref.dtype)


def _tpu_vmem_and_cores():
    """Best-effort (per-TensorCore VMEM bytes, TensorCores per chip)."""
    vmem_cap = None
    try:
        vmem_cap = int(pltpu.get_tpu_info().vmem_capacity_bytes)
    except Exception:
        vmem_cap = None
    kind = ""
    try:
        kind = jax.devices()[0].device_kind.lower()
    except Exception:
        pass
    is_v7 = "7" in kind                      # v7x: 2 TensorCores, 64 MiB VMEM/TC
    if vmem_cap is None:
        vmem_cap = 64 * 1024 * 1024          # conservative default
    if is_v7:
        vmem_cap = min(vmem_cap, 64 * 1024 * 1024)
        num_tc = 2
    else:
        vmem_cap = min(vmem_cap, 128 * 1024 * 1024)
        num_tc = 1
    return vmem_cap, num_tc


def se_module(x_nchw, w1, bn_gamma, bn_beta, bn_mean, bn_var, w2, eps=1e-5):
    """SeModule forward. x_nchw: (N, C, H, W). Returns (N, C, H, W), same dtype.

    w1: (E, C) 1x1-conv weight (C->E, no bias), w2: (C, E) 1x1-conv weight
    (E->C, no bias); BN affine + running stats of size E (eval-mode fold).
    """
    N, C, H, W = x_nchw.shape
    E = w1.shape[0]
    HW = H * W
    dtype = x_nchw.dtype

    # Merge spatial dims only -- layout-preserving, no pad, no extra HBM copy.
    x = x_nchw.reshape(N, C, HW)

    # ---- per-generation sizing ---------------------------------------------
    vmem_cap, num_tc = _tpu_vmem_and_cores()
    vmem_limit = (vmem_cap * 3) // 4            # leave headroom for Mosaic scratch
    # Double-buffered in+out blocks (4x) plus in-kernel f32 temporaries (~2x
    # when streaming bf16) must stay under the limit -> ~limit/8 per block.
    block_budget = max(1, vmem_limit // 8)
    per_sample_bytes = C * HW * jnp.dtype(dtype).itemsize
    nb = max(1, min(N, block_budget // max(per_sample_bytes, 1)))

    if num_tc > 1 and N > 1:
        # v7x: give each TensorCore several steps to pipeline and prefer an
        # even step count so the 'parallel' batch axis splits evenly.
        desired_steps = min(N, 4 * num_tc)
        nb = min(nb, max(1, pl.cdiv(N, desired_steps)))
        n_blocks = pl.cdiv(N, nb)
        while n_blocks % num_tc != 0 and nb > 1:
            nb -= 1
            n_blocks = pl.cdiv(N, nb)
    n_blocks = pl.cdiv(N, nb)

    # ---- fold BatchNorm (eval / running stats) into scale & shift ----------
    # TODO(synk): training-mode BN (batch statistics over N) not reproduced;
    # eval semantics are used, which is the standard inference fusion.
    inv_std = 1.0 / jnp.sqrt(bn_var.astype(jnp.float32) + eps)
    g32 = bn_gamma.astype(jnp.float32)
    bn_scale = (g32 * inv_std).reshape(1, E)
    bn_shift = (bn_beta.astype(jnp.float32)
                - g32 * bn_mean.astype(jnp.float32) * inv_std).reshape(1, E)

    # Pre-transpose 1x1-conv weights so the kernel runs (Nb,C)@(C,E) matmuls.
    w1t = jnp.asarray(w1, jnp.float32).T               # (C, E)
    w2t = jnp.asarray(w2, jnp.float32).T               # (E, C)

    kernel = functools.partial(_se_kernel, inv_hw=1.0 / float(HW))

    out = pl.pallas_call(
        kernel,
        out_shape=jax.ShapeDtypeStruct((N, C, HW), dtype),
        grid_spec=pltpu.PrefetchScalarGridSpec(
            num_scalar_prefetch=0,
            grid=(n_blocks,),
            in_specs=[
                # Trailing dims equal the full (C, HW) extents -> no (8,128)
                # divisibility requirement and no wrapper-side padding; the
                # batch edge block (if N % nb != 0) is masked by Mosaic and
                # each sample's result depends only on its own rows.
                pl.BlockSpec((nb, C, HW), lambda n: (n, 0, 0)),   # x block
                pl.BlockSpec((C, E), lambda n: (0, 0)),           # w1^T
                pl.BlockSpec((1, E), lambda n: (0, 0)),           # bn scale
                pl.BlockSpec((1, E), lambda n: (0, 0)),           # bn shift
                pl.BlockSpec((E, C), lambda n: (0, 0)),           # w2^T
            ],
            out_specs=pl.BlockSpec((nb, C, HW), lambda n: (n, 0, 0)),
        ),
        compiler_params=pltpu.CompilerParams(
            dimension_semantics=("parallel",),
            vmem_limit_bytes=int(vmem_limit),
        ),
    )(x, w1t, bn_scale, bn_shift, w2t)

    return out.reshape(N, C, H, W)


def _reference(x, w1, bn_gamma, bn_beta, bn_mean, bn_var, w2, eps=1e-5):
    # Pure-JAX reference of the SE forward (eval-mode BN), computed in f32.
    pooled = jnp.mean(x, axis=(2, 3), keepdims=True)                 # (N,C,1,1)
    h = jnp.einsum('ec,nchw->nehw', w1, pooled)                      # (N,E,1,1)
    inv_std = 1.0 / jnp.sqrt(bn_var + eps)
    h = h * (bn_gamma * inv_std)[None, :, None, None] + \
        (bn_beta - bn_gamma * bn_mean * inv_std)[None, :, None, None]
    h = jnp.maximum(h, 0.0)
    g = jnp.einsum('ce,nehw->nchw', w2, h)                           # (N,C,1,1)
    g = jnp.clip((g + 3.0) / 6.0, 0.0, 1.0)
    return x * g


def _make_params(key, C, E):
    k1, k2, kg, kb, km, kv = jax.random.split(key, 6)
    w1 = jax.random.normal(k1, (E, C), dtype=jnp.float32) * 0.1     # Conv2d(C->E, 1x1)
    w2 = jax.random.normal(k2, (C, E), dtype=jnp.float32) * 0.1     # Conv2d(E->C, 1x1)
    bn_gamma = 1.0 + 0.1 * jax.random.normal(kg, (E,), dtype=jnp.float32)
    bn_beta = 0.1 * jax.random.normal(kb, (E,), dtype=jnp.float32)
    bn_mean = 0.05 * jax.random.normal(km, (E,), dtype=jnp.float32)
    bn_var = jnp.abs(1.0 + 0.1 * jax.random.normal(kv, (E,), dtype=jnp.float32))
    return w1, w2, bn_gamma, bn_beta, bn_mean, bn_var


if __name__ == "__main__":
    key = jax.random.PRNGKey(0)

    # Config 1: in_size=16 -> expand_size=max(16//4,8)=8, aligned 16x16 maps.
    # Config 2: HW=7*7=49 (not 128-aligned) and odd batch -> masked edges.
    # Config 3: bf16 streaming path, C=40 -> expand_size=10, 14x14 maps.
    configs = [
        (2, 16, 16, 16, jnp.float32, 1e-4, 1e-4),
        (3, 16, 7, 7, jnp.float32, 1e-4, 1e-4),
        (4, 40, 14, 14, jnp.bfloat16, 3e-2, 3e-2),
    ]

    for (N, C, H, W, dtype, atol, rtol) in configs:
        E = max(C // 4, 8)
        key, kx, kp = jax.random.split(key, 3)
        x = jax.random.normal(kx, (N, C, H, W), dtype=jnp.float32).astype(dtype)
        w1, w2, bn_gamma, bn_beta, bn_mean, bn_var = _make_params(kp, C, E)

        out = se_module(x, w1, bn_gamma, bn_beta, bn_mean, bn_var, w2)
        out = jax.block_until_ready(out)

        ref = _reference(x.astype(jnp.float32), w1, bn_gamma, bn_beta,
                         bn_mean, bn_var, w2)
        assert out.shape == (N, C, H, W)
        assert out.dtype == dtype
        assert jnp.allclose(out.astype(jnp.float32), ref, atol=atol, rtol=rtol), \
            f"mismatch vs reference for shape {(N, C, H, W)} dtype {dtype}"

    print("KERNEL_OK")
</pallas_src>

<mosaic_0001>
module attributes {stable_mosaic.version = 11 : i64} {
  func.func @_se_kernel(%arg0: i32, %arg1: memref<2x16x256xf32, #tpu.memory_space<vmem>>, %arg2: memref<16x8xf32, #tpu.memory_space<vmem>>, %arg3: memref<1x8xf32, #tpu.memory_space<vmem>>, %arg4: memref<1x8xf32, #tpu.memory_space<vmem>>, %arg5: memref<8x16xf32, #tpu.memory_space<vmem>>, %arg6: memref<2x16x256xf32, #tpu.memory_space<vmem>>) attributes {dimension_semantics = [#tpu.dimension_semantics<parallel>], iteration_bounds = array<i64: 1>, scalar_prefetch = 0 : i64, scratch_operands = 0 : i64, tpu.core_type = #tpu.core_type<tc>, window_params = [{transform_indices = @transform_0, window_bounds = array<i64: 2, 16, 256>}, {pipeline_mode = #tpu.pipeline_mode<synchronous>, transform_indices = @transform_1, window_bounds = array<i64: 16, 8>}, {pipeline_mode = #tpu.pipeline_mode<synchronous>, transform_indices = @transform_2, window_bounds = array<i64: 1, 8>}, {pipeline_mode = #tpu.pipeline_mode<synchronous>, transform_indices = @transform_3, window_bounds = array<i64: 1, 8>}, {pipeline_mode = #tpu.pipeline_mode<synchronous>, transform_indices = @transform_4, window_bounds = array<i64: 8, 16>}, {transform_indices = @transform_5, window_bounds = array<i64: 2, 16, 256>}]} {
    %c0 = arith.constant 0 : index
    %c0_0 = arith.constant 0 : index
    %c0_1 = arith.constant 0 : index
    %0 = vector.load %arg1[%c0, %c0_0, %c0_1] : memref<2x16x256xf32, #tpu.memory_space<vmem>>, vector<2x16x256xf32>
    %cst = arith.constant dense<0.000000e+00> : vector<2x16xf32>
    %1 = vector.multi_reduction <add>, %0, %cst [2] : vector<2x16x256xf32> to vector<2x16xf32>
    %cst_2 = arith.constant 3.906250e-03 : f32
    %2 = vector.broadcast %cst_2 : f32 to vector<2x16xf32>
    %3 = arith.mulf %1, %2 : vector<2x16xf32>
    %c0_3 = arith.constant 0 : index
    %c0_4 = arith.constant 0 : index
    %4 = vector.load %arg2[%c0_3, %c0_4] : memref<16x8xf32, #tpu.memory_space<vmem>>, vector<16x8xf32>
    %cst_5 = arith.constant dense<0.000000e+00> : vector<2x8xf32>
    %5 = tpu.matmul %3, %4, %cst_5 {dimension_numbers = #tpu.dot_dimension_numbers<[1], [0], [0], [1], [0, 0, 1, 1], [], []>} : vector<2x16xf32>, vector<16x8xf32>, vector<2x8xf32> -> vector<2x8xf32>
    %c0_6 = arith.constant 0 : index
    %c0_7 = arith.constant 0 : index
    %6 = vector.load %arg3[%c0_6, %c0_7] : memref<1x8xf32, #tpu.memory_space<vmem>>, vector<1x8xf32>
    %7 = vector.broadcast %6 : vector<1x8xf32> to vector<2x8xf32>
    %8 = arith.mulf %5, %7 : vector<2x8xf32>
    %c0_8 = arith.constant 0 : index
    %c0_9 = arith.constant 0 : index
    %9 = vector.load %arg4[%c0_8, %c0_9] : memref<1x8xf32, #tpu.memory_space<vmem>>, vector<1x8xf32>
    %10 = vector.broadcast %9 : vector<1x8xf32> to vector<2x8xf32>
    %11 = arith.addf %8, %10 : vector<2x8xf32>
    %cst_10 = arith.constant 0.000000e+00 : f32
    %12 = vector.broadcast %cst_10 : f32 to vector<2x8xf32>
    %13 = arith.maximumf %11, %12 : vector<2x8xf32>
    %c0_11 = arith.constant 0 : index
    %c0_12 = arith.constant 0 : index
    %14 = vector.load %arg5[%c0_11, %c0_12] : memref<8x16xf32, #tpu.memory_space<vmem>>, vector<8x16xf32>
    %cst_13 = arith.constant dense<0.000000e+00> : vector<2x16xf32>
    %15 = tpu.matmul %13, %14, %cst_13 {dimension_numbers = #tpu.dot_dimension_numbers<[1], [0], [0], [1], [0, 0, 1, 1], [], []>} : vector<2x8xf32>, vector<8x16xf32>, vector<2x16xf32> -> vector<2x16xf32>
    %cst_14 = arith.constant 0.166666672 : f32
    %16 = vector.broadcast %cst_14 : f32 to vector<2x16xf32>
    %17 = arith.mulf %15, %16 : vector<2x16xf32>
    %cst_15 = arith.constant 5.000000e-01 : f32
    %18 = vector.broadcast %cst_15 : f32 to vector<2x16xf32>
    %19 = arith.addf %17, %18 : vector<2x16xf32>
    %cst_16 = arith.constant 0.000000e+00 : f32
    %cst_17 = arith.constant 1.000000e+00 : f32
    %20 = vector.broadcast %cst_16 : f32 to vector<2x16xf32>
    %21 = arith.maximumf %20, %19 : vector<2x16xf32>
    %22 = vector.broadcast %cst_17 : f32 to vector<2x16xf32>
    %23 = arith.minimumf %22, %21 : vector<2x16xf32>
    %24 = vector.shape_cast %23 : vector<2x16xf32> to vector<2x16x1xf32>
    %25 = vector.broadcast %24 : vector<2x16x1xf32> to vector<2x16x256xf32>
    %26 = arith.mulf %0, %25 : vector<2x16x256xf32>
    %c0_18 = arith.constant 0 : index
    %c0_19 = arith.constant 0 : index
    %c0_20 = arith.constant 0 : index
    %27 = vector.load %arg6[%c0_18, %c0_19, %c0_20] : memref<2x16x256xf32, #tpu.memory_space<vmem>>, vector<2x16x256xf32>
    tpu.vector_store %arg6[%c0_18, %c0_19, %c0_20], %26 {strides = array<i32>} : memref<2x16x256xf32, #tpu.memory_space<vmem>>, vector<2x16x256xf32>,
    return
  }
  func.func @transform_0(%arg0: i32) -> (i32, i32, i32) {
    %c0_i32 = arith.constant 0 : i32
    %c0_i32_0 = arith.constant 0 : i32
    %c0_i32_1 = arith.constant 0 : i32
    return %arg0, %c0_i32, %c0_i32_0 : i32, i32, i32
  }
  func.func @transform_1(%arg0: i32) -> (i32, i32) {
    %c0_i32 = arith.constant 0 : i32
    %c0_i32_0 = arith.constant 0 : i32
    %c0_i32_1 = arith.constant 0 : i32
    return %c0_i32, %c0_i32_0 : i32, i32
  }
  func.func @transform_2(%arg0: i32) -> (i32, i32) {
    %c0_i32 = arith.constant 0 : i32
    %c0_i32_0 = arith.constant 0 : i32
    %c0_i32_1 = arith.constant 0 : i32
    return %c0_i32, %c0_i32_0 : i32, i32
  }
  func.func @transform_3(%arg0: i32) -> (i32, i32) {
    %c0_i32 = arith.constant 0 : i32
    %c0_i32_0 = arith.constant 0 : i32
    %c0_i32_1 = arith.constant 0 : i32
    return %c0_i32, %c0_i32_0 : i32, i32
  }
  func.func @transform_4(%arg0: i32) -> (i32, i32) {
    %c0_i32 = arith.constant 0 : i32
    %c0_i32_0 = arith.constant 0 : i32
    %c0_i32_1 = arith.constant 0 : i32
    return %c0_i32, %c0_i32_0 : i32, i32
  }
  func.func @transform_5(%arg0: i32) -> (i32, i32, i32) {
    %c0_i32 = arith.constant 0 : i32
    %c0_i32_0 = arith.constant 0 : i32
    %c0_i32_1 = arith.constant 0 : i32
    return %arg0, %c0_i32, %c0_i32_0 : i32, i32, i32
  }
}

</mosaic_0001>

<bundles_post_ra>
// kernel: tpu_custom_call.1
= control target key start
LH: loop header
LB: loop body
LE: loop exit
PB: predicated region body
PF: predicated region fallthrough
CT: control target
= control target key end

     0   :  { %10 = vsyncpa [#allocation3], 0  ;;  %s506_s0 = inlined_call_operand.hbm [shape: f32[2,16,256], index: 0, kind: input, shape index: {}]   ;;  %s507_s1 = inlined_call_operand.vmem [shape: f32[16,8], index: 1, kind: input, shape index: {}]   ;;  %s508_s2 = inlined_call_operand.vmem [shape: f32[1,8], index: 2, kind: input, shape index: {}]   ;;  %s509_s3 = inlined_call_operand.vmem [shape: f32[1,8], index: 3, kind: input, shape index: {}]   ;;  %s510_s4 = inlined_call_operand.vmem [shape: f32[8,16], index: 4, kind: input, shape index: {}]   ;;  %s511_s5 = inlined_call_operand.hbm [shape: f32[2,16,256], index: 5, kind: output, shape index: {}]  }
   0x1   :  { %11 = vsyncpa [#allocation4], 0  ;;  %s392_s18 = smov [#allocation2]   ;;  %s344_s22 = scalar_lea.hbm %s506_s0, 1024 }
   0x2   :  { %s17_s19 = sshll.u32 %s392_s18, 4  ;;  %p345_p0 = scmp.ne.s32.totalorder %s506_s0, %s344_s22  ;;  %s18_s19 = int_to_ptr.vmem [resolvable:$true] %s17_s19 }
   0x3   :  { %p348_p1 = scmp.lt.u32.totalorder %s344_s22, %s506_s0 }
   0x5   :  { %p350_p2 = pnand %p348_p1, %p345_p0 }
   0x7   :  { %353 = shalt.err (!%p350_p2)
}
   0x8   :  { %s354_s27 = scalar_lea.vmem %s18_s19, 1024  ;;  %p359_p4 = scmp.lt.s32.totalorder %s18_s19, %s18_s19 }
   0x9   :  { %p355_p3 = scmp.ne.s32.totalorder %s18_s19, %s354_s27  ;;  %p360_p5 = scmp.lt.s32.totalorder %s354_s27, %s354_s27 }
   0xb   :  { %p361_p6 = por %p360_p5, %p359_p4 }
   0xd   :  { %p362_p7 = pnand %p361_p6, %p355_p3 }
   0xf   :  { %365 = shalt.err (!%p362_p7)
}
  0x10   :  { %s393_s28 = smov 256   ;;  %s394_s29 = smov 16  }
  0x11   :  { %23 = dma.hbm_to_vmem [thread:$0]  %s506_s0, 1024, %s18_s19, [#allocation3], %s393_s28, %s393_s28, %s394_s29  }
  0x12   :  { %388 = dma.done.wait [#allocation3], 1024  }
  0x13   :  { %389 = vsyncadd [#allocation3], 4294966272  ;;  %v444_v0 = vld [vmem:[#allocation2 + $0x20] sm:$0xff]  ;;  %v446_v1 = vld [vmem:[#allocation2 + $0x28] sm:$0xff]  ;;  %v395_v15 = vmov 0.0|0.0   ;;  %vm396_vm0 = vmmov 0   ;;  %v65_v17 = vlaneseq }
  0x14   :  { %v448_v2 = vld [vmem:[#allocation2] sm:$0xff]  ;;  %v49_v3 = vadd.f32 %v446_v1, %v444_v0  ;;  %v452_v4 = vld [vmem:[#allocation2 + $0x8] sm:$0xff]  ;;  %v454_v5 = vld [vmem:[#allocation2 + $0x30] sm:$0xff]  ;;  %334 = vmatprep.subr.bf16.mxu0 %v395_v15  ;;  %v397_v16 = vmov 0.0   ;;  %vm76_vm1 = vcmask 130112   ;;  %vm87_vm2 = vcmask 1041409  }
  0x15   :  { %v456_v6 = vld [vmem:[#allocation2 + $0x38] sm:$0xff]  ;;  %v43_v7 = vadd.f32 %v452_v4, %v448_v2  ;;  %v460_v8 = vld [vmem:[#allocation2 + $0x10] sm:$0xff]  ;;  %v59_v12 = vld [vmem:[%s507_s1] sm:$0xff]  ;;  %326 = vmatprep.mubr.msk.f32.mxu0 %vm396_vm0, %v397_v16  ;;  %329 = vmatprep.subr.mxu1 %v397_v16  ;;  %v66_v18 = vand.u32 127, %v65_v17  ;;  %v68_v19 = vshrl.u32 %v65_v17, 7  ;;  %vm89_vm3 = vcmask 130048  }
  0x16   :  { %v462_v9 = vld [vmem:[#allocation2 + $0x18] sm:$0xff]  ;;  %50 = vadd.xlane.f32.xlu1 %v49_v3  ;;  %v52_v10 = vadd.f32 %v456_v6, %v454_v5  ;;  %v60_v13 = vld [vmem:[%s507_s1 + $0x8] sm:$0xff]  ;;  %331 = vmatprep.mubr.msk.f32.mxu1 %vm396_vm0, %v397_v16  ;;  %v179_v38 = vld [vmem:[%s510_s4] sm:$0xff]  ;;  %vm180_vm4 = vcmask 64512  }
  0x17   :  { %44 = vadd.xlane.f32.xlu0 %v43_v7  ;;  %v46_v11 = vadd.f32 %v462_v9, %v460_v8  ;;  %v335_v14 = vpack.c.bf16 %v60_v13, %v59_v12  ;;  %v71_v20 = vadd.s32 4294967288, %v66_v18  ;;  %v69_v23 = vsub.s32 %v66_v18, %v68_v19  ;;  %330 = vmatpush3.msra.mxu1 %v179_v38  ;;  %v314_v39 = vld [vmem:[%s508_s2] ss:$0 sm:$0xff]  ;;  %s398_s2 = smov [#allocation5]  }
  0x18   :  { %v315_v41 = vld [vmem:[%s509_s3] ss:$0 sm:$0xff]  ;;  %v260_v51 = vsub.s32 0, %v68_v19  ;;  %v271_v54 = vsub.s32 1, %v68_v19  ;;  %s301_s3 = sshll.u32 %s398_s2, 4  ;;  %s302_s3 = int_to_ptr.vmem [resolvable:$true] %s301_s3 }
  0x19   :  { %336 = vmatpush3.bf16.msra.mxu0 %v335_v14  ;;  %v74_v25 = vsub.s32 %v71_v20, %v68_v19  ;;  %s366_s4 = scalar_lea.vmem %s302_s3, 1024  ;;  %p371_p9 = scmp.lt.s32.totalorder %s302_s3, %s302_s3 }
  0x1a   :  { %53 = vadd.xlane.f32.xlu1 %v52_v10  ;;  %p367_p8 = scmp.ne.s32.totalorder %s302_s3, %s366_s4  ;;  %p372_p10 = scmp.lt.s32.totalorder %s366_s4, %s366_s4 }
  0x1b   :  { %47 = vadd.xlane.f32.xlu0 %v46_v11 }
  0x1c   :  { %p373_p11 = por %p372_p10, %p371_p9 }
  0x1e   :  { %p374_p12 = pnand %p373_p11, %p367_p8 }
  0xa3   :  { %v51_v21 = vpop.xlane.xlu1 %50 }
  0xa4   :  { %v45_v22 = vpop.xlane.xlu0 %44  ;;  %v57_v24 = vmul.f32 0.00390625, %v51_v21 }
  0xa5   :  { %v55_v26 = vmul.f32 0.00390625, %v45_v22 }
  0xa6   :  { %v81_v31 = vrot.slane %v57_v24, %v69_v23 }
  0xa7   :  { %v54_v27 = vpop.xlane.xlu1 %53  ;;  %v70_v33 = vrot.slane %v55_v26, %v69_v23 }
  0xa8   :  { %v58_v28 = vmul.f32 0.00390625, %v54_v27  ;;  %v48_v29 = vpop.xlane.xlu0 %47 }
  0xa9   :  { %v56_v30 = vmul.f32 0.00390625, %v48_v29 }
  0xaa   :  { %v85_v32 = vrot.slane %v58_v28, %v74_v25 }
  0xab   :  { %v75_v34 = vrot.slane %v56_v30, %v74_v25 }
  0xac   :  { %v86_v35 = vsel %vm76_vm1, %v85_v32, %v81_v31 }
  0xad   :  { %v77_v36 = vsel %vm76_vm1, %v75_v34, %v70_v33 }
  0xae   :  { %v88_v37 = vsel %vm87_vm2, %v86_v35, %v77_v36 }
  0xaf   :  { %327 = vmatmul.mubr.msk.f32.vlgmr.msra.gmra.mrb[0].mxu0 %vm89_vm3, %v88_v37 }
 0x182   :  { %v158_v40 = vpop.f32.mrb[0].mxu0 }
 0x183   :  { %v169_v42 = vmul.f32 %v314_v39, %v158_v40  ;;  %v328_v43 = vpop.f32.mrb[1].mxu0 }
 0x185   :  { %v177_v44 = vadd.f32 %v315_v41, %v169_v42 }
 0x187   :  { %v178_v45 = vmax.f32 %v177_v44, 0.0 }
 0x189   :  { %332 = vmatmul.mubr.msk.f32.vlgmr.msra.gmra.mrb[0].mxu1 %vm180_vm4, %v178_v45 }
 0x25c   :  { %v250_v46 = vpop.f32.mrb[0].mxu1 }
 0x25d   :  { %v254_v47 = vmul.f32 0.16666667, %v250_v46  ;;  %v333_v48 = vpop.f32.mrb[1].mxu1 }
 0x25f   :  { %v255_v49 = vadd.f32 0.5, %v254_v47 }
 0x261   :  { %v256_v50 = vmax.f32 %v255_v49, 0.0 }
 0x263   :  { %v257_v52 = vmin.f32 %v256_v50, 1.0 }
 0x265   :  { %v261_v53 = vrot.slane %v257_v52, %v260_v51  ;;  %v272_v55 = vrot.slane %v257_v52, %v271_v54 }
 0x267   :  { %267 = vbcast.lane.b32.xlu1 %v261_v53, 264  ;;  %263 = vbcast.lane.b32.xlu0 %v261_v53, 256 }
 0x26b   :  { %274 = vbcast.lane.b32.xlu1 %v272_v55, 256 }
 0x26f   :  { %278 = vbcast.lane.b32.xlu1 %v272_v55, 264 }
 0x2d9   :  { %v268_v56 = vpop.permute.xlu1 %267  ;;  %v264_v57 = vpop.permute.xlu0 %263 }
 0x2da   :  { %v282_v58 = vmul.f32 %v268_v56, %v460_v8  ;;  %v283_v59 = vmul.f32 %v268_v56, %v462_v9  ;;  %v280_v60 = vmul.f32 %v264_v57, %v448_v2  ;;  %v281_v61 = vmul.f32 %v264_v57, %v452_v4 }
 0x2dc   :  { %290 = vst [vmem:[#allocation5 + $0x10] sm:$0xff] %v282_v58  ;;  %291 = vst [vmem:[#allocation5 + $0x18] sm:$0xff] %v283_v59 }
 0x2dd   :  { %288 = vst [vmem:[#allocation5] sm:$0xff] %v280_v60  ;;  %289 = vst [vmem:[#allocation5 + $0x8] sm:$0xff] %v281_v61  ;;  %v275_v62 = vpop.permute.xlu1 %274 }
 0x2de   :  { %v284_v63 = vmul.f32 %v275_v62, %v444_v0  ;;  %v285_v3 = vmul.f32 %v275_v62, %v446_v1 }
 0x2e0   :  { %292 = vst [vmem:[#allocation5 + $0x20] sm:$0xff] %v284_v63  ;;  %293 = vst [vmem:[#allocation5 + $0x28] sm:$0xff] %v285_v3 }
 0x2e1   :  { %v279_v7 = vpop.permute.xlu1 %278 }
 0x2e2   :  { %v286_v8 = vmul.f32 %v279_v7, %v454_v5  ;;  %v287_v2 = vmul.f32 %v279_v7, %v456_v6 }
 0x2e4   :  { %294 = vst [vmem:[#allocation5 + $0x30] sm:$0xff] %v286_v8  ;;  %295 = vst [vmem:[#allocation5 + $0x38] sm:$0xff] %v287_v2 }
 0x2e5   :  { %377 = shalt.err (!%p374_p12)
}
 0x2e6   :  { %s378_s17 = scalar_lea.hbm %s511_s5, 1024 }
 0x2e7   :  { %p379_p13 = scmp.ne.s32.totalorder %s511_s5, %s378_s17  ;;  %p382_p0 = scmp.lt.u32.totalorder %s378_s17, %s511_s5 }
 0x2e9   :  { %p384_p1 = pnand %p382_p0, %p379_p13 }
 0x2eb   :  { %387 = shalt.err (!%p384_p1)
}
 0x2ec   :  { %307 = dma.vmem_to_hbm [thread:$0]  %s302_s3, 1024, %s511_s5, [#allocation4], %s393_s28, %s393_s28, %s394_s29  }
 0x2ed   :  { %390 = dma.done.wait [#allocation4], 1024  }
 0x2ee   :  { %391 = vsyncadd [#allocation4], 4294966272 }
 0x2ef   :  { %311 = vsyncpa [#allocation3], 1 }
 0x2f0   :  { %312 = vsyncpa [#allocation4], 1 }

</bundles_post_ra>
